<compile_context>
chip_gen: v6e
topology: v6e:2x2x1
jax: 0.10.0
libtpu: 0.0.40
codegen_flags: <defaults>
</compile_context>

<pallas_src>
import jax
import jax.numpy as jnp
from jax.experimental import pallas as pl
from jax.experimental.pallas import tpu as pltpu


_MAX_TILE_B = 2048  # row-tile cap (keeps per-step DMA descriptors reasonable)


def _round_up(n, m):
    return -(-n // m) * m


def _vmem_params():
    """Returns (per-step tile budget bytes, vmem_limit_bytes), generation-aware."""
    try:
        cap = pltpu.get_tpu_info().vmem_capacity_bytes
    except Exception:
        cap = 128 * 1024 * 1024
    if cap <= 64 * 1024 * 1024:
        # v7x-class: 64 MiB physical VMEM per TensorCore -> tighter budget.
        return 20 * 1024 * 1024, 40 * 1024 * 1024
    # v5e / v6e: 128 MiB physical VMEM -> bigger tiles, raise scoped limit.
    return 32 * 1024 * 1024, 64 * 1024 * 1024


def _dff_kernel(x_ref, o_ref):
    # o block is (tb, 2*D): first half sin(x), second half cos(x)
    # (cos is even, so cos(-x) == cos(x) exactly).
    x = x_ref[...]
    d = x_ref.shape[-1]
    o_ref[:, :d] = jnp.sin(x)
    o_ref[:, d:] = jnp.cos(x)


def dff_layer_4_linear(x):
    """Pallas DFFLayer4Linear.forward: (..., D) -> concat(sin(x), cos(-x), -1)."""
    orig_shape = x.shape
    D = orig_shape[-1]
    x2 = x.reshape(-1, D)
    B = x2.shape[0]

    itemsize = jnp.dtype(x.dtype).itemsize
    packing = max(1, 4 // itemsize)
    sub = 8 * packing  # sublane granule: 8 for f32, 16 for bf16

    budget, vmem_limit = _vmem_params()

    # Row tile: largest multiple of the sublane granule whose double-buffered
    # input (tb*D) + output (tb*2*D) blocks fit the budget.  Feature axis is
    # never tiled.  (If D is not a multiple of 128 the boundary stores are
    # lane-masked but still correct; callers with big odd D can pad upstream.)
    # TODO(synk): for extreme D (> ~150K f32 per row) add an inner half-split.
    tb_cap = max(sub, budget // (6 * D * itemsize))
    tb = max(sub, min(_MAX_TILE_B, tb_cap) // sub * sub)
    b_sub = _round_up(B, sub)
    tb = min(tb, b_sub)
    # Guarantee >= 2 row blocks whenever the batch allows it so both v7x
    # TensorCores get work on the "parallel" axis (harmless on v5e/v6e).
    if b_sub >= 2 * sub and tb > b_sub // 2:
        tb = max(sub, (b_sub // 2) // sub * sub)

    b_pad = _round_up(B, tb)
    if b_pad != B:
        x2 = jnp.pad(x2, ((0, b_pad - B), (0, 0)))

    grid = (b_pad // tb,)

    out = pl.pallas_call(
        _dff_kernel,
        out_shape=jax.ShapeDtypeStruct((b_pad, 2 * D), x.dtype),
        grid_spec=pl.GridSpec(
            grid=grid,
            in_specs=[pl.BlockSpec((tb, D), lambda i: (i, 0))],
            out_specs=pl.BlockSpec((tb, 2 * D), lambda i: (i, 0)),
        ),
        compiler_params=pltpu.CompilerParams(
            dimension_semantics=("parallel",),
            vmem_limit_bytes=vmem_limit,
        ),
        cost_estimate=pl.CostEstimate(
            flops=0,
            transcendentals=2 * b_pad * D,
            bytes_accessed=3 * b_pad * D * itemsize,
        ),
    )(x2)

    if b_pad != B:
        out = out[:B]
    # Row-major view back to (..., 2*D); identical layout to torch.cat(dim=-1).
    return out.reshape(*orig_shape[:-1], 2 * D)


if __name__ == "__main__":
    # Shape consistent with a Linear input: batch=8, hidden=32.
    x = jax.random.normal(jax.random.PRNGKey(0), (8, 32), dtype=jnp.float32)
    out = jax.block_until_ready(dff_layer_4_linear(x))
    ref = jnp.concatenate([jnp.sin(x), jnp.cos(-x)], axis=-1)
    assert out.shape == (8, 64)
    assert jnp.allclose(out, ref, atol=1e-5, rtol=1e-5)

    # Ragged-batch / multi-dim case (exercises row padding + >1 grid block).
    x2 = jax.random.normal(jax.random.PRNGKey(1), (3, 5, 128), dtype=jnp.float32)
    out2 = jax.block_until_ready(dff_layer_4_linear(x2))
    ref2 = jnp.concatenate([jnp.sin(x2), jnp.cos(-x2)], axis=-1)
    assert out2.shape == (3, 5, 256)
    assert jnp.allclose(out2, ref2, atol=1e-5, rtol=1e-5)

    print("KERNEL_OK")
</pallas_src>

<mosaic_0001>
module attributes {stable_mosaic.version = 11 : i64} {
  func.func @_dff_kernel(%arg0: i32, %arg1: memref<8x32xf32, #tpu.memory_space<vmem>>, %arg2: memref<8x64xf32, #tpu.memory_space<vmem>>) attributes {dimension_semantics = [#tpu.dimension_semantics<parallel>], iteration_bounds = array<i64: 1>, scalar_prefetch = 0 : i64, scratch_operands = 0 : i64, tpu.core_type = #tpu.core_type<tc>, window_params = [{transform_indices = @transform_0, window_bounds = array<i64: 8, 32>}, {transform_indices = @transform_1, window_bounds = array<i64: 8, 64>}]} {
    %c0 = arith.constant 0 : index
    %c0_0 = arith.constant 0 : index
    %0 = vector.load %arg1[%c0, %c0_0] : memref<8x32xf32, #tpu.memory_space<vmem>>, vector<8x32xf32>
    %1 = math.sin %0 : vector<8x32xf32>
    %c0_1 = arith.constant 0 : index
    %c0_2 = arith.constant 0 : index
    %2 = vector.load %arg2[%c0_1, %c0_2] : memref<8x64xf32, #tpu.memory_space<vmem>>, vector<8x32xf32>
    tpu.vector_store %arg2[%c0_1, %c0_2], %1 {strides = array<i32>} : memref<8x64xf32, #tpu.memory_space<vmem>>, vector<8x32xf32>,
    %3 = math.cos %0 : vector<8x32xf32>
    %c0_3 = arith.constant 0 : index
    %c32 = arith.constant 32 : index
    %4 = vector.load %arg2[%c0_3, %c32] : memref<8x64xf32, #tpu.memory_space<vmem>>, vector<8x32xf32>
    tpu.vector_store %arg2[%c0_3, %c32], %3 {strides = array<i32>} : memref<8x64xf32, #tpu.memory_space<vmem>>, vector<8x32xf32>,
    return
  }
  func.func @transform_0(%arg0: i32) -> (i32, i32) {
    %c0_i32 = arith.constant 0 : i32
    %c0_i32_0 = arith.constant 0 : i32
    return %arg0, %c0_i32 : i32, i32
  }
  func.func @transform_1(%arg0: i32) -> (i32, i32) {
    %c0_i32 = arith.constant 0 : i32
    %c0_i32_0 = arith.constant 0 : i32
    return %arg0, %c0_i32 : i32, i32
  }
}

</mosaic_0001>

<bundles_post_ra>
// kernel: tpu_custom_call.1
= control target key start
LH: loop header
LB: loop body
LE: loop exit
PB: predicated region body
PF: predicated region fallthrough
CT: control target
= control target key end

     0   :  { %6 = vsyncpa [#allocation3], 0  ;;  %s367_s0 = inlined_call_operand.hbm [shape: f32[8,32], index: 0, kind: input, shape index: {}]   ;;  %s368_s1 = inlined_call_operand.hbm [shape: f32[8,64], index: 1, kind: output, shape index: {}]  }
   0x1   :  { %7 = vsyncpa [#allocation4], 0  ;;  %s321_s6 = smov [#allocation2]  }
   0x2   :  { %s14_s7 = sshll.u32 %s321_s6, 4  ;;  %s15_s7 = int_to_ptr.vmem [resolvable:$true] %s14_s7 }
   0x3   :  { %s285_s8 = scalar_lea.vmem %s15_s7, 128  ;;  %p290_p1 = scmp.lt.s32.totalorder %s15_s7, %s15_s7 }
   0x4   :  { %p286_p0 = scmp.ne.s32.totalorder %s15_s7, %s285_s8  ;;  %p291_p2 = scmp.lt.s32.totalorder %s285_s8, %s285_s8 }
   0x6   :  { %p292_p3 = por %p291_p2, %p290_p1 }
   0x8   :  { %p293_p4 = pnand %p292_p3, %p286_p0 }
   0xa   :  { %296 = shalt.err (!%p293_p4)
}
   0xb   :  { %17 = dma.hbm_to_vmem [thread:$0]  %s367_s0, 128, %s15_s7, [#allocation3]  }
   0xc   :  { %317 = dma.done.wait [#allocation3], 128  }
   0xd   :  { %318 = vsyncadd [#allocation3], 4294967168  ;;  %v343_v0 = vld [vmem:[#allocation2] sm:$0xff]  ;;  %v322_v12 = vmov 683565275   ;;  %s328_s0 = smov 32  }
   0xe   :  { %v25_v1 = vand.u32 2139095040, %v343_v0  ;;  %v22_v3 = vand.u32 2147483647, %v343_v0  ;;  %v323_v14 = vmov 2475754826   ;;  %vm24_vm7 = vcmp.lt.s32.totalorder %v343_v0, 0 }
   0xf   :  { %v324_v16 = vmov 2131351028   ;;  %v325_v18 = vmov 2102212464   ;;  %v326_v20 = vmov 920167782   ;;  %vm114_vm15 = vweird.f32 %v343_v0 }
  0x10   :  { %v26_v2 = vshrl.u32 %v25_v1, 23  ;;  %v29_v6 = vand.u32 8388607, %v22_v3  ;;  %v327_v27 = vmov 1326507024   ;;  %s329_s11 = smov [#allocation5]  }
  0x11   :  { %vm23_vm8 = vcmp.le.f32.partialorder %v22_v3, 0.7853982  ;;  %s243_s12 = sshll.u32 %s329_s11, 4  ;;  %s244_s12 = int_to_ptr.vmem [resolvable:$true] %s243_s12 }
  0x12   :  { %v252_v4 = vadd.s32 4294967169, %v26_v2  ;;  %v30_v9 = vor.u32 8388608, %v29_v6  ;;  %s297_s13 = scalar_lea.vmem %s244_s12, 128  ;;  %p302_p6 = scmp.lt.s32.totalorder %s244_s12, %s244_s12 }
  0x13   :  { %p298_p5 = scmp.ne.s32.totalorder %s244_s12, %s297_s13  ;;  %p303_p7 = scmp.lt.s32.totalorder %s297_s13, %s297_s13 }
  0x14   :  { %v32_v5 = vadd.s32 1, %v252_v4  ;;  %v70_v29 = vshll.u32 %v30_v9, 8 }
  0x15   :  { %p304_p8 = por %p303_p7, %p302_p6 }
  0x16   :  { %vm33_vm0 = vcmp.gt.s32.totalorder %v32_v5, 0 }
  0x17   :  { %v34_v7 = vsel %vm33_vm0, %v32_v5, 0  ;;  %vm126_vm0 = vcmask 261120   ;;  %p305_p9 = pnand %p304_p8, %p298_p5 }
  0x18   :  { %v36_v8 = vand.u32 31, %v34_v7  ;;  %v35_v10 = vshrl.u32 %v34_v7, 5 }
  0x1a   :  { %v37_v11 = vsub.s32 32, %v36_v8  ;;  %v39_v13 = vshll.u32 %v322_v12, %v36_v8  ;;  %v42_v15 = vshll.u32 %v323_v14, %v36_v8  ;;  %v45_v17 = vshll.u32 %v324_v16, %v36_v8 }
  0x1b   :  { %v48_v19 = vshll.u32 %v325_v18, %v36_v8  ;;  %v51_v21 = vshll.u32 %v326_v20, %v36_v8  ;;  %vm54_vm1 = vcmp.lt.s32.totalorder %v35_v10, 1  ;;  %vm57_vm2 = vcmp.lt.s32.totalorder %v35_v10, 4 }
  0x1c   :  { %v38_v22 = vshrl.u32 %v322_v12, %v37_v11  ;;  %v40_v23 = vshrl.u32 %v323_v14, %v37_v11  ;;  %v43_v24 = vshrl.u32 %v324_v16, %v37_v11  ;;  %v46_v25 = vshrl.u32 %v325_v18, %v37_v11 }
  0x1d   :  { %v49_v26 = vshrl.u32 %v326_v20, %v37_v11  ;;  %v52_v28 = vshrl.u32 %v327_v27, %v37_v11  ;;  %vm55_vm3 = vcmp.lt.s32.totalorder %v35_v10, 2  ;;  %vm56_vm4 = vcmp.lt.s32.totalorder %v35_v10, 3 }
  0x1e   :  { %v41_v30 = vor.u32 %v40_v23, %v39_v13  ;;  %v44_v31 = vor.u32 %v43_v24, %v42_v15  ;;  %v47_v32 = vor.u32 %v46_v25, %v45_v17 }
  0x1f   :  { %v50_v33 = vor.u32 %v49_v26, %v48_v19  ;;  %v53_v34 = vor.u32 %v52_v28, %v51_v21 }
  0x20   :  { %v58_v35 = vsel %vm54_vm1, %v38_v22, %v41_v30  ;;  %v59_v36 = vsel %vm57_vm2, %v47_v32, 2102212464  ;;  %v62_v37 = vsel %vm54_vm1, %v41_v30, %v44_v31  ;;  %v66_v38 = vsel %vm54_vm1, %v44_v31, %v47_v32 }
  0x21   :  { %v60_v39 = vsel %vm56_vm4, %v44_v31, %v59_v36  ;;  %v63_v40 = vsel %vm57_vm2, %v50_v33, 920167782  ;;  %v67_v41 = vsel %vm57_vm2, %v53_v34, 1326507024  ;;  %vm235_vm1 = vcmask 523520  }
  0x22   :  { %v64_v42 = vsel %vm56_vm4, %v47_v32, %v63_v40  ;;  %v68_v43 = vsel %vm56_vm4, %v50_v33, %v67_v41  ;;  %v61_v44 = vsel %vm55_vm3, %v58_v35, %v60_v39 }
  0x23   :  { %v65_v45 = vsel %vm55_vm3, %v62_v37, %v64_v42  ;;  %v69_v46 = vsel %vm55_vm3, %v66_v38, %v68_v43  ;;  %v77_v51 = vmul.u32 %v70_v29, %v61_v44 }
  0x24   :  { %v349_v47 = vmul.u32.u64.low %v70_v29, %v69_v46  ;;  %v350_v48 = vmul.u32.u64.high %v70_v29, %v69_v46, %v349_v47  ;;  %v352_v49 = vmul.u32.u64.low %v70_v29, %v65_v45  ;;  %v353_v50 = vmul.u32.u64.high %v70_v29, %v65_v45, %v352_v49 }
  0x26   :  { %vm79_vm5 = vc.u32 %v350_v48, %v352_v49  ;;  %v80_v52 = vadd.s32 1, %v353_v50  ;;  %v78_v63 = vadd.s32 %v352_v49, %v350_v48 }
  0x28   :  { %v81_v53 = vsel %vm79_vm5, %v80_v52, %v353_v50 }
  0x29   :  { %v82_v54 = vadd.s32 %v81_v53, %v77_v51 }
  0x2b   :  { %v83_v55 = vadd.s32 536870912, %v82_v54 }
  0x2d   :  { %v84_v56 = vshrl.u32 %v83_v55, 30 }
  0x2f   :  { %v85_v57 = vshll.u32 %v84_v56, 30  ;;  %v108_v15 = vsub.s32 4, %v84_v56 }
  0x31   :  { %v86_v58 = vsub.s32 %v82_v54, %v85_v57  ;;  %v109_v18 = vsel %vm24_vm7, %v108_v15, %v84_v56 }
  0x32   :  { %v111_v19 = vsel %vm23_vm8, 0, %v109_v18 }
  0x33   :  { %v88_v59 = vsub.s32 0, %v86_v58  ;;  %v115_v20 = vadd.s32 3, %v111_v19  ;;  %v221_v22 = vand.u32 3, %v111_v19 }
  0x35   :  { %v253_v60 = vmin.u32 %v88_v59, %v86_v58  ;;  %v116_v21 = vand.u32 3, %v115_v20  ;;  %vm226_vm10 = vcmp.eq.s32.totalorder %v221_v22, 2  ;;  %vm223_vm12 = vcmp.eq.s32.totalorder %v221_v22, 0 }
  0x36   :  { %vm222_vm14 = vcmp.lt.s32.totalorder %v221_v22, 2 }
  0x37   :  { %v90_v61 = vclz %v253_v60  ;;  %vm121_vm9 = vcmp.eq.s32.totalorder %v116_v21, 2  ;;  %vm118_vm11 = vcmp.eq.s32.totalorder %v116_v21, 0  ;;  %vm117_vm13 = vcmp.lt.s32.totalorder %v116_v21, 2 }
  0x39   :  { %v254_v62 = vadd.s32 4294967294, %v90_v61 }
  0x3b   :  { %vm255_vm6 = vcmp.lt.s32.totalorder %v254_v62, 0 }
  0x3c   :  { %v93_v1 = vsel %vm255_vm6, 0, %v254_v62 }
  0x3d   :  { %v94_v2 = vsub.s32 32, %v93_v1  ;;  %v95_v4 = vshll.u32 %v86_v58, %v93_v1  ;;  %v98_v5 = vsub.s32 4294967266, %v93_v1 }
  0x3f   :  { %v96_v6 = vshrl.u32 %v78_v63, %v94_v2  ;;  %v99_v7 = vadd.s32 127, %v98_v5 }
  0x41   :  { %v97_v8 = vor.u32 %v96_v6, %v95_v4  ;;  %v100_v9 = vshll.u32 %v99_v7, 23 }
  0x43   :  { %v101_v10 = vor.u32 4788187, %v100_v9  ;;  %v104_v11 = vcvt.s32.f32 %v97_v8 }
  0x45   :  { %v102_v12 = vand.u32 2147483647, %v101_v10 }
  0x47   :  { %v105_v13 = vmul.f32 %v104_v11, %v102_v12 }
  0x49   :  { %v106_v14 = vxor.u32 2147483648, %v105_v13 }
  0x4b   :  { %v107_v16 = vsel %vm24_vm7, %v106_v14, %v105_v13 }
  0x4c   :  { %v110_v17 = vsel %vm23_vm8, %v343_v0, %v107_v16 }
  0x4d   :  { %273 = vcosq.f32 %v110_v17 }
  0x4e   :  { %275 = vsinq.f32 %v110_v17 }
  0x5a   :  { %v274_v23 = vpop.eup %273 }
  0x5b   :  { %v276_v24 = vpop.eup %275  ;;  %v122_v25 = vxor.u32 2147483648, %v274_v23 }
  0x5c   :  { %v119_v3 = vxor.u32 2147483648, %v276_v24 }
  0x5d   :  { %v123_v26 = vsel %vm121_vm9, %v122_v25, %v276_v24  ;;  %v228_v27 = vsel %vm226_vm10, %v122_v25, %v276_v24 }
  0x5e   :  { %v120_v28 = vsel %vm118_vm11, %v274_v23, %v119_v3  ;;  %v225_v29 = vsel %vm223_vm12, %v274_v23, %v119_v3 }
  0x5f   :  { %v124_v30 = vsel %vm117_vm13, %v120_v28, %v123_v26  ;;  %v229_v31 = vsel %vm222_vm14, %v225_v29, %v228_v27 }
  0x60   :  { %v125_v32 = vsel %vm114_vm15, nan, %v124_v30  ;;  %v230_v33 = vsel %vm114_vm15, nan, %v229_v31 }
  0x61   :  { %127 = vst.msk [vmem:[#allocation5] sm:$0xff] %vm126_vm0, %v125_v32  ;;  %232 = vrot.lane.b32.xlu0 %v230_v33, %s328_s0 }
  0xd3   :  { %v233_v34 = vpop.permute.xlu0 %232 }
  0xd4   :  { %236 = vst.msk [vmem:[#allocation5] sm:$0xff] %vm235_vm1, %v233_v34 }
  0xd5   :  { %308 = shalt.err (!%p305_p9)
}
  0xd6   :  { %246 = dma.vmem_to_hbm [thread:$0]  %s244_s12, 128, %s368_s1, [#allocation4]  }
  0xd7   :  { %319 = dma.done.wait [#allocation4], 128  }
  0xd8   :  { %320 = vsyncadd [#allocation4], 4294967168 }
  0xd9   :  { %250 = vsyncpa [#allocation3], 1 }
  0xda   :  { %251 = vsyncpa [#allocation4], 1 }

</bundles_post_ra>
